<compile_context>
chip_gen: v5e
topology: v5e:2x2
jax: 0.10.0
libtpu: 0.0.40
codegen_flags: <defaults>
</compile_context>

<pallas_src>
import jax
import jax.numpy as jnp
from jax.experimental import pallas as pl
from jax.experimental.pallas import tpu as pltpu


def _round_up(x, m):
    return (x + m - 1) // m * m


def _unpool_scatter_kernel(sorted_idx_ref, perm_ref, starts_ref, h_ref, out_ref):
    """One (block_rows, D_pad) output tile:
         out[...] = 0
         for j in [starts[m], starts[m+1]):            # only this block's hits
             out[sorted_idx[j] - row0, :] = h[perm[j], :]
    """
    m = pl.program_id(0)
    block_rows = out_ref.shape[0]          # static
    row0 = m * block_rows

    # memset: rows not hit by idx stay zero.
    out_ref[...] = jnp.zeros_like(out_ref)

    lo = starts_ref[m]                     # SMEM scalar reads (scalar prefetch)
    hi = starts_ref[m + 1]

    def body(j, carry):
        r = sorted_idx_ref[j]              # global output row, bucketed to this block
        src = perm_ref[j]                  # source row inside h
        # full-lane-width, dynamic-sublane single-row copy
        out_ref[pl.ds(r - row0, 1), :] = h_ref[pl.ds(src, 1), :]
        return carry

    # Dynamic per-block trip count; total iterations over the whole grid == kk.
    jax.lax.fori_loop(lo, hi, body, 0)


def _pick_block_rows(N, kk_pad, D_pad, itemsize, sub):
    # VMEM budget: output tile is double-buffered; h is held resident (counted
    # twice to be conservative about Pallas buffering).  Stay well under the
    # 32 MiB default scoped limit (v7x physical VMEM per TC is only 64 MiB).
    budget = 24 << 20
    h_bytes = 2 * kk_pad * D_pad * itemsize
    avail = max(budget - h_bytes, 2 * sub * D_pad * itemsize)
    br = max((avail // (2 * D_pad * itemsize)) // sub * sub, sub)
    br = min(br, 2048)                     # more parallel blocks -> better megacore balance
    if N > sub:
        # keep >= 2 row blocks so the "parallel" axis can use both v7x TensorCores
        br = min(br, _round_up((N + 1) // 2, sub))
    br = min(br, _round_up(N, sub))
    return int(max(br, sub))


def unpool_forward(g, h, pre_h, idx, *, block_rows=None):
    """Pallas implementation of Unpool.forward(g, h, pre_h, idx)."""
    del pre_h                              # unused by the reference forward pass
    N = g.shape[0]
    kk, D = h.shape
    dtype = h.dtype
    itemsize = jnp.dtype(dtype).itemsize

    # dtype-aware sublane multiple; lane dim padded to 128 for unmasked stores.
    sub = {4: 8, 2: 16, 1: 32}.get(itemsize, 8)
    D_pad = _round_up(D, 128)
    kk_pad = _round_up(kk, sub)

    if block_rows is None:
        block_rows = _pick_block_rows(N, kk_pad, D_pad, itemsize, sub)
    else:
        block_rows = max(sub, _round_up(block_rows, sub))
    grid = pl.cdiv(N, block_rows)          # partial last block handled by Pallas masking

    if (kk_pad, D_pad) != (kk, D):
        h_pad = jnp.zeros((kk_pad, D_pad), dtype).at[:kk, :D].set(h)
    else:
        h_pad = h

    # Bucket the scatter by output row-block (all cheap XLA ops on kk scalars).
    idx = idx.astype(jnp.int32)
    order = jnp.argsort(idx).astype(jnp.int32)      # h[order[j]] -> row sorted_idx[j]
    sorted_idx = idx[order]
    starts = jnp.searchsorted(
        sorted_idx,
        jnp.arange(grid + 1, dtype=jnp.int32) * jnp.int32(block_rows),
        side="left",
    ).astype(jnp.int32)

    vmem_need = (2 * block_rows + 2 * kk_pad) * D_pad * itemsize
    vmem_limit = int(min(max(2 * vmem_need, 16 << 20), 60 << 20))

    cost = pl.CostEstimate(
        flops=0,
        transcendentals=0,
        bytes_accessed=int((N * D_pad + kk_pad * D_pad) * itemsize),
    )

    new_h_pad = pl.pallas_call(
        _unpool_scatter_kernel,
        out_shape=jax.ShapeDtypeStruct((N, D_pad), dtype),
        grid_spec=pltpu.PrefetchScalarGridSpec(
            num_scalar_prefetch=3,                       # sorted_idx, perm, starts -> SMEM
            grid=(grid,),
            # h stays resident in VMEM across all output row-blocks
            in_specs=[pl.BlockSpec((kk_pad, D_pad),
                                   lambda m, si, pr, st: (0, 0))],
            out_specs=pl.BlockSpec((block_rows, D_pad),
                                   lambda m, si, pr, st: (m, 0)),
        ),
        compiler_params=pltpu.CompilerParams(
            dimension_semantics=("parallel",),
            vmem_limit_bytes=vmem_limit),
        cost_estimate=cost,
    )(sorted_idx, order, starts, h_pad)

    new_h = new_h_pad[:, :D] if D_pad != D else new_h_pad

    # g is returned unchanged by the reference module: pure pass-through.
    return g, new_h


if __name__ == "__main__":
    key = jax.random.PRNGKey(0)
    k_g, k_h, k_pre, k_idx = jax.random.split(key, 4)

    N, D, kk = 16, 32, 8                   # nodes, feature dim, kept nodes (k = 0.5)

    g = jax.random.uniform(k_g, (N, N), dtype=jnp.float32)
    h = jax.random.normal(k_h, (kk, D), dtype=jnp.float32)
    pre_h = jax.random.normal(k_pre, (N, D), dtype=jnp.float32)   # unused by forward
    idx = jax.random.permutation(k_idx, N)[:kk].astype(jnp.int32)

    g_out, new_h = unpool_forward(g, h, pre_h, idx)
    jax.block_until_ready((g_out, new_h))

    # Reference semantics: new_h = zeros((N, D)); new_h[idx] = h
    ref = jnp.zeros((N, D), jnp.float32).at[idx].set(h)
    assert new_h.shape == (N, D)
    assert jnp.array_equal(g_out, g)
    assert jnp.array_equal(new_h, ref)
    print("KERNEL_OK")
</pallas_src>

<mosaic_0001>
module attributes {stable_mosaic.version = 11 : i64} {
  func.func @_unpool_scatter_kernel(%arg0: i32, %arg1: memref<8xi32, #tpu.memory_space<smem>>, %arg2: memref<8xi32, #tpu.memory_space<smem>>, %arg3: memref<3xi32, #tpu.memory_space<smem>>, %arg4: memref<8x128xf32, #tpu.memory_space<vmem>>, %arg5: memref<8x128xf32, #tpu.memory_space<vmem>>) attributes {dimension_semantics = [#tpu.dimension_semantics<parallel>], iteration_bounds = array<i64: 2>, scalar_prefetch = 3 : i64, scratch_operands = 0 : i64, tpu.core_type = #tpu.core_type<tc>, window_params = [{pipeline_mode = #tpu.pipeline_mode<synchronous>, transform_indices = @transform_0, window_bounds = array<i64: 8, 128>}, {transform_indices = @transform_1, window_bounds = array<i64: 8, 128>}]} {
    %c8_i32 = arith.constant 8 : i32
    %0 = arith.muli %arg0, %c8_i32 : i32
    %cst = arith.constant 0.000000e+00 : f32
    %1 = vector.broadcast %cst : f32 to vector<8x128xf32>
    %c0 = arith.constant 0 : index
    %c0_0 = arith.constant 0 : index
    %2 = vector.load %arg5[%c0, %c0_0] : memref<8x128xf32, #tpu.memory_space<vmem>>, vector<8x128xf32>
    tpu.vector_store %arg5[%c0, %c0_0], %1 {strides = array<i32>} : memref<8x128xf32, #tpu.memory_space<vmem>>, vector<8x128xf32>,
    %3 = arith.index_cast %arg0 : i32 to index
    %4 = memref.load %arg3[%3] : memref<3xi32, #tpu.memory_space<smem>>
    %c1_i32 = arith.constant 1 : i32
    %5 = arith.addi %arg0, %c1_i32 : i32
    %6 = arith.index_cast %5 : i32 to index
    %7 = memref.load %arg3[%6] : memref<3xi32, #tpu.memory_space<smem>>
    %c0_i32 = arith.constant 0 : i32
    %8 = arith.subi %7, %4 : i32
    %9 = arith.addi %4, %8 : i32
    %c1_i32_1 = arith.constant 1 : i32
    scf.for %arg6 = %4 to %9 step %c1_i32_1  : i32 {
      %10 = arith.index_cast %arg6 : i32 to index
      %11 = memref.load %arg1[%10] : memref<8xi32, #tpu.memory_space<smem>>
      %12 = arith.index_cast %arg6 : i32 to index
      %13 = memref.load %arg2[%12] : memref<8xi32, #tpu.memory_space<smem>>
      %14 = arith.index_cast %13 : i32 to index
      %c0_2 = arith.constant 0 : index
      %15 = vector.load %arg4[%14, %c0_2] : memref<8x128xf32, #tpu.memory_space<vmem>>, vector<1x128xf32>
      %16 = arith.subi %11, %0 : i32
      %17 = arith.index_cast %16 : i32 to index
      %c0_3 = arith.constant 0 : index
      %18 = vector.load %arg5[%17, %c0_3] : memref<8x128xf32, #tpu.memory_space<vmem>>, vector<1x128xf32>
      tpu.vector_store %arg5[%17, %c0_3], %15 {strides = array<i32>} : memref<8x128xf32, #tpu.memory_space<vmem>>, vector<1x128xf32>,
    }
    return
  }
  func.func @transform_0(%arg0: i32, %arg1: memref<8xi32, #tpu.memory_space<smem>>, %arg2: memref<8xi32, #tpu.memory_space<smem>>, %arg3: memref<3xi32, #tpu.memory_space<smem>>) -> (i32, i32) {
    %c0_i32 = arith.constant 0 : i32
    %c0_i32_0 = arith.constant 0 : i32
    %c0_i32_1 = arith.constant 0 : i32
    return %c0_i32, %c0_i32_0 : i32, i32
  }
  func.func @transform_1(%arg0: i32, %arg1: memref<8xi32, #tpu.memory_space<smem>>, %arg2: memref<8xi32, #tpu.memory_space<smem>>, %arg3: memref<3xi32, #tpu.memory_space<smem>>) -> (i32, i32) {
    %c0_i32 = arith.constant 0 : i32
    %c0_i32_0 = arith.constant 0 : i32
    return %arg0, %c0_i32 : i32, i32
  }
}

</mosaic_0001>

<bundles_post_ra>
// kernel: tpu_custom_call.1
= control target key start
LH: loop header
LB: loop body
LE: loop exit
PB: predicated region body
PF: predicated region fallthrough
CT: control target
= control target key end

     0   :  { %s448_s21 = smov [#allocation3]   ;;  %s449_s22 = smov [#allocation4]   ;;  %s577_s0 = inlined_call_operand.hbm [shape: s32[8], index: 0, kind: input, shape index: {}]   ;;  %s578_s3 = inlined_call_operand.hbm [shape: f32[8,128], index: 3, kind: input, shape index: {}]   ;;  %s579_s4 = inlined_call_operand.hbm [shape: f32[16,128], index: 4, kind: output, shape index: {}]   ;;  %s580_s1 = inlined_call_operand.hbm [shape: s32[8], index: 1, kind: input, shape index: {}]   ;;  %s581_s2 = inlined_call_operand.vmem [shape: s32[3], index: 2, kind: input, shape index: {}]  }
   0x1   :  { %s10_s17 = sshll.u32 %s577_s0, 4  ;;  %s15_s20 = sshll.u32 %s580_s1, 4  ;;  %s11_s17 = int_to_ptr.hbm [resolvable:$true] %s10_s17  ;;  %s16_s20 = int_to_ptr.hbm [resolvable:$true] %s15_s20 }
   0x2   :  { %13 = dma.hbm_to_smem %s11_s17, 16, %s448_s21, [#allocation2] }
   0x3   :  { %18 = dma.hbm_to_smem %s16_s20, 16, %s449_s22, [#allocation2] }
   0x4   :  { %s20_s25 = sshll.u32 %s581_s2, 4  ;;  %s450_s26 = smov [#allocation5]   ;;  %s21_s25 = int_to_ptr.vmem [resolvable:$true] %s20_s25 }
   0x5   :  { %23 = dma.vmem_to_smem %s21_s25, 16, %s450_s26, [#allocation2] }
   0x6   :  { %418 = dma.done.wait [#allocation2], 48 }
   0x7   :  { %419 = vsyncadd [#allocation2], 4294967248 }
   0x8   :  { %26 = sfence }
   0x9   :  { %27 = vsyncpa [#allocation7], 0 }
   0xa   :  { %28 = vsyncpa [#allocation8], 0 }
   0xb   :  { %30 = vsyncpa [#allocation8 + $0x1], 0  ;;  %s487_s0 = smov 0   ;;  %s489_s1 = smov 0  }
   0xc   :  { %s491_s27 = smov 0   ;;  %s493_s28 = smov 0  }
   0xd LB: > { %s508_s2 = sadd.s32 4294967295, %s442_s28   ;;  %s231_s29 = sadd.s32 4294967294, %s442_s28   ;;  %s442_s28 = sphi %s493_s28, %s587_s28   ;;  %s438_s27 = sphi %s491_s27, %s586_s27   ;;  %s434_s1 = sphi %s489_s1, %s585_s1   ;;  %s430_s0 = sphi %s487_s0, %s584_s0  }
   0xe   : > { %s512_s30 = sadd.s32 1, %s442_s28   ;;  %s64_s5 = sadd.s32 1, %s438_s27 }
   0xf   : > { %s61_s6 = ssub.s32 %s442_s28, %s512_s30  ;;  %p74_p0 = scmp.ne.s32.totalorder %s438_s27, %s434_s1 }
  0x10   : > { %p62_p1 = scmp.eq.s32.totalorder %s61_s6, 0  ;;  %p75_p2 = scmp.eq.s32.totalorder %s508_s2, 1 }
  0x11   : > { %p80_p3 = scmp.ne.s32.totalorder %s434_s1, %s430_s0  ;;  %p81_p4 = scmp.eq.s32.totalorder %s231_s29, 1 }
  0x12   : > { %s523_s7 = scalar_select %p62_p1, %s438_s27, %s64_s5  }
  0x13   : > { %p525_p5 = por %p75_p2, %p74_p0  ;;  %p529_p6 = por %p81_p4, %p80_p3 }
  0x14   : > { %p232_p7 = scmp.ge.s32.totalorder %s442_s28, 1  ;;  %p88_p8 = scmp.lt.s32.totalorder %s442_s28, 3 }
  0x15   : > { %p256_p9 = scmp.eq.s32.totalorder %s508_s2, 0  ;;  %s100_s12 = sshll.u32 %s578_s3, 4  ;;  %s101_s12 = int_to_ptr.hbm [resolvable:$true] %s100_s12 }
  0x16   : > { %p89_p10 = pnand %p232_p7, %p88_p8  ;;  %s451_s13 = smov [#allocation6]  }
  0x17   : > { %s102_s14 = sshll.u32 %s451_s13, 4  ;;  %s103_s14 = int_to_ptr.vmem [resolvable:$true] %s102_s14 }
  0x18   : > { %p248_p11 = pneg %p89_p10  ;;  %115 = sbr.rel (%p89_p10) target bundleno = 69 (0x45), region = 24 }
  0x1a   : > { %p249_p12 = pnand %p256_p9, %p248_p11 }
  0x1c   : > { %251 = dma.hbm_to_vmem [thread:$0]  (!%p249_p12), %s101_s12, 128, %s103_s14, [#allocation7]  }
  0x1d   : > { %421 = dma.done.wait (%p256_p9), [#allocation7], 128  }
  0x1e   : > { %423 = vsyncadd (%p256_p9), [#allocation7], 4294967168  ;;  %s134_s15 = sadd.s32 1, %s508_s2  ;;  %s128_s16 = sand.u32 1, %s434_s1   ;;  %v452_v0 = vmov 0.0  }
  0x1f   : > { %s133_s17 = sld [smem:[#allocation5 + %s508_s2]]   ;;  %s236_s18 = sshll.u32 %s128_s16, 3 }
  0x20   : > { %s135_s19 = sld [smem:[#allocation5 + %s134_s15]]  ;;  %s237_s20 = sshll.u32 %s508_s2, 3 }
  0x21   : > { %s130_s21 = scalar_lea.vmem [#allocation9], %s236_s18 }
  0x22   : > { %132 = vst [vmem:[%s130_s21] sm:$0xff] %v452_v0 }
  0x26   : > { %p203_p13 = scmp.ge.s32.totalorder %s133_s17, %s135_s19 }
  0x27   : > { %s444_s22 = smov (!%p203_p13), %s133_s17  }
  0x28   : > { %204 = sbr.rel (%p203_p13) target bundleno = 55 (0x37), region = 64 }
  0x2d LB: >> { %s142_s23 = sld [smem:[#allocation3 + %s446_s22]]  ;;  %s446_s22 = sphi %s444_s22, %s139_s22  }
  0x2e   : >> { %s143_s24 = sld [smem:[#allocation4 + %s446_s22]]  ;;  %s139_s22 = sadd.s32 1, %s446_s22  }
  0x2f   : >> { %p138_p0 = scmp.ge.s32.totalorder %s139_s22, %s135_s19 }
  0x32   : > { %141 = sbr.rel (!%p138_p0) target bundleno = 45 (0x2d), region = 70 }
  0x33   : >> { %s146_s25 = ssub.s32 %s142_s23, %s237_s20 }
  0x34   : >> { %s147_s26 = scalar_lea.vmem %s130_s21, %s146_s25 [#allocation9]  ;;  %s144_s29 = scalar_lea.vmem [#allocation6], %s143_s24 }
  0x35   : >> { %v145_v1 = vld [vmem:[%s144_s29] sm:$0x1] }
  0x36   : >> { %148 = vst [vmem:[%s147_s26] sm:$0x1] %v145_v1 }
  0x37 PF: > { %s160_s6 = scalar_lea.hbm %s579_s4, %s237_s20  ;;  %s162_s10 = sshll.u32 %s130_s21, 4  ;;  %s163_s10 = int_to_ptr.vmem [resolvable:$true] %s162_s10 }
  0x38   : > { %s164_s11 = sshll.u32 %s160_s6, 4  ;;  %s150_s12 = scalar_lea.sflag [#allocation8], %s128_s16  ;;  %s165_s11 = int_to_ptr.hbm [resolvable:$true] %s164_s11 }
  0x39   : > { %s384_s13 = sshra.s32 %s165_s11, 4  ;;  %s390_s18 = scalar_lea.hbm %s579_s4, 16  ;;  %s385_s13 = int_to_ptr.hbm [resolvable:$true] %s384_s13 }
  0x3a   : > { %s386_s14 = scalar_lea.hbm %s385_s13, 8  ;;  %p391_p4 = scmp.lt.s32.totalorder %s385_s13, %s579_s4 }
  0x3b   : > { %p387_p1 = scmp.ne.s32.totalorder %s385_s13, %s386_s14  ;;  %p392_p7 = scmp.lt.s32.totalorder %s390_s18, %s386_s14 }
  0x3d   : > { %p388_p2 = pnand %p387_p1, %p525_p5  ;;  %p393_p8 = por %p392_p7, %p391_p4 }
  0x3f   : > { %p389_p3 = pneg %p388_p2 }
  0x41   : > { %p394_p9 = pnand %p393_p8, %p389_p3 }
  0x43   : > { %397 = shalt.err (!%p394_p9)
}
  0x44   : > { %246 = dma.vmem_to_hbm [thread:$0]  (%p525_p5), %s163_s10, 128, %s165_s11, %s150_s12  }
  0x45 PF: > { %p258_p10 = scmp.ge.s32.totalorder %s442_s28, 2  ;;  %s176_s16 = sand.u32 1, %s430_s0  }
  0x46   : > { %s177_s20 = scalar_lea.sflag [#allocation8], %s176_s16 }
  0x47   : > { %p253_p11 = pnand %p258_p10, %p529_p6 }
  0x49   : > { %p254_p12 = pneg %p253_p11 }
  0x4b   : > { %425 = dma.done.wait (%p254_p12), %s177_s20, 128  }
  0x4c   : > { %427 = vsyncadd (%p254_p12), %s177_s20, 4294967168  ;;  %p33_p13 = scmp.ge.s32.totalorder %s512_s30, 4   ;;  %s584_s0 = smov %s434_s1 }
  0x4d   : > { %s585_s1 = smov %s438_s27  ;;  %s586_s27 = smov %s523_s7 }
  0x4e   : > { %s587_s28 = smov %s512_s30  ;;  %35 = sbr.rel (!%p33_p13) target bundleno = 13 (0xd), region = 81 }
  0x53   :  { %183 = vsyncpa [#allocation7], 1 }
  0x54   :  { %185 = vsyncpa [#allocation7 + $0x1], 1 }
  0x55   :  { %186 = vsyncpa [#allocation8], 1 }
  0x56   :  { %188 = vsyncpa [#allocation8 + $0x1], 1 }

</bundles_post_ra>
